<compile_context>
chip_gen: v6e
topology: v6e:2x2x1
jax: 0.10.0
libtpu: 0.0.40
codegen_flags: <defaults>
</compile_context>

<pallas_src>
import functools

import jax
import jax.numpy as jnp
from jax.experimental import pallas as pl
from jax.experimental.pallas import tpu as pltpu


def _ln2d_kernel(x_ref, o_ref, *, eps):
    # Block is (bn, C, lt); each (n, lane) column is normalized over C.
    x = x_ref[...].astype(jnp.float32)
    mu = jnp.mean(x, axis=1, keepdims=True)
    xc = x - mu
    var = jnp.mean(xc * xc, axis=1, keepdims=True)   # two-pass variance
    o_ref[...] = (xc * jax.lax.rsqrt(var + eps)).astype(o_ref.dtype)


def _vmem_budget():
    """Generation-aware (block_budget_bytes, vmem_limit_bytes)."""
    try:
        cap = int(pltpu.get_tpu_info().vmem_capacity_bytes)
    except Exception:
        cap = 64 << 20          # conservative fallback (v7x-sized)
    # 2 in + 2 out double-buffered blocks must stay well under the limit.
    block_budget = min(cap // 8, 16 << 20)
    vmem_limit = (cap * 3) // 4
    return block_budget, vmem_limit


def _pick_tiles(n, c, hw, itemsize, budget):
    """Choose (bn, lt): batch-block and lane-tile sizes."""
    # Lane tile: full slab if it fits (contiguous per-image DMA), else the
    # largest multiple-of-128 divisor of hw that fits the budget.
    if c * hw * itemsize <= budget:
        lt = hw
    else:
        best = 0
        for d in range(128, hw, 128):
            if hw % d == 0 and c * d * itemsize <= budget and d > best:
                best = d
        lt = best if best > 0 else (128 if hw % 128 == 0 else hw)

    # Batch blocking: largest divisor of n keeping the block under budget.
    bn = 1
    for d in range(1, n + 1):
        if n % d == 0 and d * c * lt * itemsize <= budget:
            bn = d

    # Guarantee >= 2 grid steps (both v7x TensorCores get work; negligible
    # cost on single-TC v5e/v6e).
    if (n // bn) * (hw // lt) == 1:
        if n > 1:
            bn = max(d for d in range(1, n) if n % d == 0)
        else:
            cands = [d for d in range(128, hw, 128) if hw % d == 0]
            if cands:
                lt = max(cands)
    return bn, lt


@functools.partial(jax.jit, static_argnames=("eps",))
def layernorm2d(x_nchw, *, eps=1e-6):
    """LayerNorm over the channel axis of an NCHW tensor (no affine)."""
    n, c, h, w = x_nchw.shape
    hw = h * w
    itemsize = jnp.dtype(x_nchw.dtype).itemsize
    budget, vmem_limit = _vmem_budget()
    bn, lt = _pick_tiles(n, c, hw, itemsize, budget)

    x3 = x_nchw.reshape(n, c, hw)                     # no dtype cast here
    elems = n * c * hw
    cost = pl.CostEstimate(
        flops=5 * elems,
        transcendentals=n * hw,                       # one rsqrt per column
        bytes_accessed=2 * elems * itemsize,
    )

    out = pl.pallas_call(
        functools.partial(_ln2d_kernel, eps=eps),
        out_shape=jax.ShapeDtypeStruct((n, c, hw), x_nchw.dtype),
        grid=(n // bn, hw // lt),
        in_specs=[pl.BlockSpec((bn, c, lt), lambda i, j: (i, 0, j))],
        out_specs=pl.BlockSpec((bn, c, lt), lambda i, j: (i, 0, j)),
        compiler_params=pltpu.CompilerParams(
            dimension_semantics=("parallel", "parallel"),
            vmem_limit_bytes=vmem_limit),
        cost_estimate=cost,
    )(x3)
    return out.reshape(n, c, h, w)


def _reference(x, eps=1e-6):
    xt = jnp.transpose(x.astype(jnp.float32), (0, 2, 3, 1))
    mu = jnp.mean(xt, axis=-1, keepdims=True)
    var = jnp.mean((xt - mu) ** 2, axis=-1, keepdims=True)
    y = (xt - mu) * jax.lax.rsqrt(var + eps)
    return jnp.transpose(y, (0, 3, 1, 2))


if __name__ == "__main__":
    key = jax.random.PRNGKey(0)
    x = jax.random.normal(key, (2, 4, 16, 16), jnp.float32)   # NCHW, like PyTorch

    y = jax.block_until_ready(layernorm2d(x))
    ref = _reference(x)
    assert y.shape == x.shape and y.dtype == x.dtype
    assert bool(jnp.all(jnp.isfinite(y)))
    assert float(jnp.max(jnp.abs(y - ref))) < 1e-5

    # bf16 smoke test: output keeps the input dtype and stays finite.
    xb = x.astype(jnp.bfloat16)
    yb = jax.block_until_ready(layernorm2d(xb))
    assert yb.dtype == jnp.bfloat16 and yb.shape == x.shape
    assert bool(jnp.all(jnp.isfinite(yb.astype(jnp.float32))))
    assert float(jnp.max(jnp.abs(yb.astype(jnp.float32) - ref))) < 5e-2

    print("KERNEL_OK")
</pallas_src>

<mosaic_0001>
module attributes {stable_mosaic.version = 11 : i64} {
  func.func @_ln2d_kernel(%arg0: i32, %arg1: i32, %arg2: memref<1x4x256xf32, #tpu.memory_space<vmem>>, %arg3: memref<1x4x256xf32, #tpu.memory_space<vmem>>) attributes {dimension_semantics = [#tpu.dimension_semantics<parallel>, #tpu.dimension_semantics<parallel>], iteration_bounds = array<i64: 2, 1>, scalar_prefetch = 0 : i64, scratch_operands = 0 : i64, tpu.core_type = #tpu.core_type<tc>, window_params = [{transform_indices = @transform_0, window_bounds = array<i64: 1, 4, 256>}, {transform_indices = @transform_1, window_bounds = array<i64: 1, 4, 256>}]} {
    %c0 = arith.constant 0 : index
    %c0_0 = arith.constant 0 : index
    %c0_1 = arith.constant 0 : index
    %0 = vector.load %arg2[%c0, %c0_0, %c0_1] : memref<1x4x256xf32, #tpu.memory_space<vmem>>, vector<1x4x256xf32>
    %cst = arith.constant dense<0.000000e+00> : vector<1x256xf32>
    %1 = vector.multi_reduction <add>, %0, %cst [1] : vector<1x4x256xf32> to vector<1x256xf32>
    %2 = vector.shape_cast %1 : vector<1x256xf32> to vector<1x1x256xf32>
    %cst_2 = arith.constant 4.000000e+00 : f32
    %3 = vector.broadcast %cst_2 : f32 to vector<1x1x256xf32>
    %4 = arith.divf %2, %3 : vector<1x1x256xf32>
    %5 = vector.broadcast %4 : vector<1x1x256xf32> to vector<1x4x256xf32>
    %6 = arith.subf %0, %5 : vector<1x4x256xf32>
    %7 = arith.mulf %6, %6 : vector<1x4x256xf32>
    %cst_3 = arith.constant dense<0.000000e+00> : vector<1x256xf32>
    %8 = vector.multi_reduction <add>, %7, %cst_3 [1] : vector<1x4x256xf32> to vector<1x256xf32>
    %9 = vector.shape_cast %8 : vector<1x256xf32> to vector<1x1x256xf32>
    %cst_4 = arith.constant 4.000000e+00 : f32
    %10 = vector.broadcast %cst_4 : f32 to vector<1x1x256xf32>
    %11 = arith.divf %9, %10 : vector<1x1x256xf32>
    %cst_5 = arith.constant 9.99999997E-7 : f32
    %12 = vector.broadcast %cst_5 : f32 to vector<1x1x256xf32>
    %13 = arith.addf %11, %12 : vector<1x1x256xf32>
    %14 = math.rsqrt %13 : vector<1x1x256xf32>
    %15 = vector.broadcast %14 : vector<1x1x256xf32> to vector<1x4x256xf32>
    %16 = arith.mulf %6, %15 : vector<1x4x256xf32>
    %c0_6 = arith.constant 0 : index
    %c0_7 = arith.constant 0 : index
    %c0_8 = arith.constant 0 : index
    %17 = vector.load %arg3[%c0_6, %c0_7, %c0_8] : memref<1x4x256xf32, #tpu.memory_space<vmem>>, vector<1x4x256xf32>
    tpu.vector_store %arg3[%c0_6, %c0_7, %c0_8], %16 {strides = array<i32>} : memref<1x4x256xf32, #tpu.memory_space<vmem>>, vector<1x4x256xf32>,
    return
  }
  func.func @transform_0(%arg0: i32, %arg1: i32) -> (i32, i32, i32) {
    %c0_i32 = arith.constant 0 : i32
    %c0_i32_0 = arith.constant 0 : i32
    return %arg0, %c0_i32, %arg1 : i32, i32, i32
  }
  func.func @transform_1(%arg0: i32, %arg1: i32) -> (i32, i32, i32) {
    %c0_i32 = arith.constant 0 : i32
    %c0_i32_0 = arith.constant 0 : i32
    return %arg0, %c0_i32, %arg1 : i32, i32, i32
  }
}

</mosaic_0001>

<bundles_post_ra>
// kernel: layernorm2d.1
= control target key start
LH: loop header
LB: loop body
LE: loop exit
PB: predicated region body
PF: predicated region fallthrough
CT: control target
= control target key end

     0   :  { %s376_s6 = smov 0   ;;  %s378_s7 = smov 0   ;;  %s420_s0 = inlined_call_operand.vmem [shape: f32[2,4,256], index: 0, kind: input, shape index: {}]   ;;  %s421_s1 = inlined_call_operand.vmem [shape: f32[2,4,256], index: 1, kind: output, shape index: {}]  }
   0x1   :  { %s380_s8 = smov 0  }
   0x2 LB: > { %s23_s9 = sadd.s32 1, %s360_s7  ;;  %p304_p0 = scmp.ge.s32.totalorder %s364_s8, 1  ;;  %s364_s8 = sphi %s380_s8, %s11_s8   ;;  %s360_s7 = sphi %s378_s7, %s423_s7   ;;  %s356_s6 = sphi %s376_s6, %s422_s6  }
   0x3   : > { %p25_p1 = scmp.ge.s32.totalorder %s23_s9, 2  ;;  %p108_p2 = scmp.lt.s32.totalorder %s364_s8, 3 }
   0x5   : > { %s425_s9 = smov (%p25_p1, %s23_s9), 0  ;;  %p109_p3 = pnand %p304_p0, %p108_p2 }
   0x6   : > { %p137_p4 = scmp.lt.s32.totalorder (!%p109_p3), %s356_s6, 1 }
   0x7   : > { %112 = sbr.rel (%p109_p3) target bundleno = 77 (0x4d), region = 24 }
   0xc   : > { %s427_s6 = smov (!%p137_p4, %s356_s6), 1  ;;  %vm160_vm0 = vcmask 1043456  }
   0xd   : > { %s311_s10 = sshll.u32 %s427_s6, 3 }
   0xe   : > { %s144_s13 = scalar_lea.vmem %s420_s0, %s311_s10  ;;  %s154_s16 = scalar_lea.vmem %s421_s1, %s311_s10 }
   0xf   : > { %v156_v0 = vld [vmem:[%s144_s13] sm:$0xff] }
  0x10   : > { %v158_v1 = vcombine.high %v156_v0, %v156_v0  ;;  %v161_v2 = vsel %vm160_vm0, %v156_v0, 0.0 }
  0x11   : > { %v162_v3 = vrot.slane %v161_v2, 4 }
  0x12   : > { %v168_v4 = vsel %vm160_vm0, %v158_v1, 0.0 }
  0x13   : > { %v163_v5 = vadd.f32 %v162_v3, %v161_v2  ;;  %v169_v6 = vrot.slane %v168_v4, 4 }
  0x15   : > { %v164_v7 = vrot.slane %v163_v5, 2  ;;  %v170_v8 = vadd.f32 %v169_v6, %v168_v4 }
  0x17   : > { %v165_v9 = vadd.f32 %v164_v7, %v163_v5  ;;  %v171_v10 = vrot.slane %v170_v8, 2 }
  0x19   : > { %v166_v11 = vrot.slane %v165_v9, 1  ;;  %v172_v12 = vadd.f32 %v171_v10, %v170_v8 }
  0x1b   : > { %v167_v13 = vadd.f32 %v166_v11, %v165_v9  ;;  %v173_v14 = vrot.slane %v172_v12, 1 }
  0x1d   : > { %v174_v15 = vadd.f32 %v173_v14, %v172_v12  ;;  %v176_v16 = vmul.f32 0.25, %v167_v13 }
  0x1f   : > { %v177_v17 = vmul.f32 0.25, %v174_v15 }
  0x21   : > { %v180_v18 = vcombine.low %v176_v16, %v177_v17 }
  0x23   : > { %v182_v19 = vsub.f32 %v156_v0, %v180_v18 }
  0x25   : > { %v183_v20 = vmul.f32 %v182_v19, %v182_v19 }
  0x27   : > { %v185_v21 = vcombine.high %v183_v20, %v183_v20  ;;  %v187_v22 = vsel %vm160_vm0, %v183_v20, 0.0 }
  0x28   : > { %v188_v23 = vrot.slane %v187_v22, 4 }
  0x29   : > { %v194_v24 = vsel %vm160_vm0, %v185_v21, 0.0 }
  0x2a   : > { %v189_v25 = vadd.f32 %v188_v23, %v187_v22  ;;  %v195_v26 = vrot.slane %v194_v24, 4 }
  0x2c   : > { %v190_v27 = vrot.slane %v189_v25, 2  ;;  %v196_v28 = vadd.f32 %v195_v26, %v194_v24 }
  0x2e   : > { %v191_v29 = vadd.f32 %v190_v27, %v189_v25  ;;  %v197_v30 = vrot.slane %v196_v28, 2 }
  0x30   : > { %v192_v31 = vrot.slane %v191_v29, 1  ;;  %v198_v32 = vadd.f32 %v197_v30, %v196_v28 }
  0x32   : > { %v193_v33 = vadd.f32 %v192_v31, %v191_v29  ;;  %v199_v34 = vrot.slane %v198_v32, 1 }
  0x34   : > { %v200_v35 = vadd.f32 %v199_v34, %v198_v32  ;;  %v201_v36 = vmul.f32 0.25, %v193_v33 }
  0x36   : > { %v202_v37 = vmul.f32 0.25, %v200_v35  ;;  %v203_v38 = vadd.f32 1e-06, %v201_v36 }
  0x38   : > { %v204_v39 = vadd.f32 1e-06, %v202_v37  ;;  %338 = vrsqrt.f32 %v203_v38 }
  0x3a   : > { %340 = vrsqrt.f32 %v204_v39 }
  0x45   : > { %v339_v40 = vpop.eup %338 }
  0x47   : > { %v341_v41 = vpop.eup %340 }
  0x48   : > { %v209_v42 = vcombine.low %v339_v40, %v341_v41 }
  0x4a   : > { %v211_v43 = vmul.f32 %v209_v42, %v182_v19 }
  0x4c   : > { %212 = vst [vmem:[%s154_s16] sm:$0xff] %v211_v43 }
  0x4d PF: > { %s11_s8 = sadd.s32 1, %s364_s8   ;;  %s422_s6 = smov %s360_s7 }
  0x4e   : > { %p8_p5 = scmp.ge.s32.totalorder %s11_s8, 4   ;;  %s423_s7 = smov %s425_s9 }
  0x50   :  { %10 = sbr.rel (!%p8_p5) target bundleno = 2 (0x2), region = 54 }

</bundles_post_ra>
